<compile_context>
chip_gen: v5e
topology: v5e:2x2
jax: 0.10.0
libtpu: 0.0.40
codegen_flags: <defaults>
</compile_context>

<pallas_src>
import jax
import jax.numpy as jnp
from jax import lax
from jax.experimental import pallas as pl
from jax.experimental.pallas import tpu as pltpu


def diag_gaussian_mean_kernel(x_ref, w_ref, b_ref, mean_ref):
    # mean = x @ W^T + b  (contract x's feature dim against w's feature dim,
    # f32 accumulation on the MXU). w_ref is [out_p, inp_dim].
    mean = lax.dot_general(
        x_ref[...],
        w_ref[...],
        dimension_numbers=(((1,), (1,)), ((), ())),
        preferred_element_type=jnp.float32,
    ) + b_ref[...]
    mean_ref[...] = mean.astype(mean_ref.dtype)


def diag_gaussian(x, weight, bias, logstd_bias, *, tile_b=1024):
    """x: [B, inp_dim]; weight: [out_dim, inp_dim]; bias, logstd_bias: [out_dim].

    Returns (mean, scale), each [B, out_dim] — the parameters of the
    FixedNormal distribution produced by the PyTorch module's forward pass.
    """
    B, inp_dim = x.shape
    out_dim = weight.shape[0]
    dtype = x.dtype
    itemsize = jnp.dtype(dtype).itemsize

    LANE = 128
    SUBLANE = 8

    # --- lane-dense output: pad out_dim up to a multiple of 128 -------------
    out_p = ((out_dim + LANE - 1) // LANE) * LANE
    w_p = jnp.pad(weight, ((0, out_p - out_dim), (0, 0)))        # [out_p, inp_dim]
    b_p = jnp.pad(bias, (0, out_p - out_dim)).reshape(1, out_p)  # [1, out_p]

    # --- batch tiling: tile_b rows per grid step, batch padded to multiple --
    tile_b = max(SUBLANE, min(tile_b, B))
    tile_b = ((tile_b + SUBLANE - 1) // SUBLANE) * SUBLANE

    # VMEM budget guard: 2x double-buffered (x tile + mean tile) + resident
    # weight/bias must stay well under the scoped VMEM limit (~16-32 MiB).
    vmem_budget = 24 * 1024 * 1024
    resident = (w_p.size + b_p.size) * itemsize
    per_row = 2 * (inp_dim + out_p) * itemsize  # double-buffered in + out row
    max_rows = max(SUBLANE, (vmem_budget - resident) // max(per_row, 1))
    max_rows = (max_rows // SUBLANE) * SUBLANE
    tile_b = min(tile_b, max_rows)

    B_p = ((B + tile_b - 1) // tile_b) * tile_b
    x_p = jnp.pad(x, ((0, B_p - B), (0, 0))) if B_p != B else x

    grid = (B_p // tile_b,)

    cost = pl.CostEstimate(
        flops=2 * B_p * inp_dim * out_p,
        transcendentals=0,
        bytes_accessed=(x_p.size + w_p.size + b_p.size + B_p * out_p) * itemsize,
    )

    mean_p = pl.pallas_call(
        diag_gaussian_mean_kernel,
        out_shape=jax.ShapeDtypeStruct((B_p, out_p), dtype),
        grid=grid,
        in_specs=[
            # x: streamed batch tiles (double-buffered by Pallas).
            pl.BlockSpec((tile_b, inp_dim), lambda i: (i, 0)),
            # weight / bias: constant index_map -> VMEM-resident across grid.
            pl.BlockSpec((out_p, inp_dim), lambda i: (0, 0)),
            pl.BlockSpec((1, out_p), lambda i: (0, 0)),
        ],
        out_specs=pl.BlockSpec((tile_b, out_p), lambda i: (i, 0)),
        compiler_params=pltpu.CompilerParams(
            dimension_semantics=("parallel",),
        ),
        cost_estimate=cost,
    )(x_p, w_p, b_p)

    mean = mean_p[:B, :out_dim]

    # scale = exp(logstd), logstd = zeros_like(mean) + logstd_bias.
    # x-independent -> plain XLA broadcast, kept out of the kernel.
    scale = jnp.broadcast_to(jnp.exp(logstd_bias)[None, :], (B, out_dim))
    return mean, scale


if __name__ == "__main__":
    # Small shapes consistent with the module: batch=8, inp_dim=32, out_dim=8.
    B, inp_dim, out_dim = 8, 32, 8

    key = jax.random.PRNGKey(0)
    kx, kw, kb = jax.random.split(key, 3)

    x = jax.random.normal(kx, (B, inp_dim), dtype=jnp.float32)

    # Deterministic parameter init mimicking nn.Linear's default
    # (uniform(-1/sqrt(inp_dim), 1/sqrt(inp_dim))).
    bound = 1.0 / jnp.sqrt(jnp.float32(inp_dim))
    weight = jax.random.uniform(kw, (out_dim, inp_dim), jnp.float32, -bound, bound)
    bias = jax.random.uniform(kb, (out_dim,), jnp.float32, -bound, bound)
    # AddBias is initialized with torch.zeros(out_dim).
    logstd_bias = jnp.zeros((out_dim,), dtype=jnp.float32)

    mean, scale = diag_gaussian(x, weight, bias, logstd_bias)
    jax.block_until_ready((mean, scale))

    # Reference check in plain JAX.
    mean_ref = x @ weight.T + bias
    scale_ref = jnp.broadcast_to(jnp.exp(logstd_bias)[None, :], (B, out_dim))
    assert jnp.allclose(mean, mean_ref, atol=1e-5), "mean mismatch"
    assert jnp.allclose(scale, scale_ref, atol=1e-6), "scale mismatch"

    print("KERNEL_OK")
</pallas_src>

<mosaic_0001>
module attributes {stable_mosaic.version = 11 : i64} {
  func.func @diag_gaussian_mean_kernel(%arg0: i32, %arg1: memref<8x32xf32, #tpu.memory_space<vmem>>, %arg2: memref<128x32xf32, #tpu.memory_space<vmem>>, %arg3: memref<1x128xf32, #tpu.memory_space<vmem>>, %arg4: memref<8x128xf32, #tpu.memory_space<vmem>>) attributes {dimension_semantics = [#tpu.dimension_semantics<parallel>], iteration_bounds = array<i64: 1>, scalar_prefetch = 0 : i64, scratch_operands = 0 : i64, tpu.core_type = #tpu.core_type<tc>, window_params = [{transform_indices = @transform_0, window_bounds = array<i64: 8, 32>}, {pipeline_mode = #tpu.pipeline_mode<synchronous>, transform_indices = @transform_1, window_bounds = array<i64: 128, 32>}, {pipeline_mode = #tpu.pipeline_mode<synchronous>, transform_indices = @transform_2, window_bounds = array<i64: 1, 128>}, {transform_indices = @transform_3, window_bounds = array<i64: 8, 128>}]} {
    %c0 = arith.constant 0 : index
    %c0_0 = arith.constant 0 : index
    %0 = vector.load %arg1[%c0, %c0_0] : memref<8x32xf32, #tpu.memory_space<vmem>>, vector<8x32xf32>
    %c0_1 = arith.constant 0 : index
    %c0_2 = arith.constant 0 : index
    %1 = vector.load %arg2[%c0_1, %c0_2] : memref<128x32xf32, #tpu.memory_space<vmem>>, vector<128x32xf32>
    %cst = arith.constant dense<0.000000e+00> : vector<8x128xf32>
    %2 = tpu.matmul %0, %1, %cst {dimension_numbers = #tpu.dot_dimension_numbers<[1], [1], [0], [0], [0, 0, 1, 0], [], []>} : vector<8x32xf32>, vector<128x32xf32>, vector<8x128xf32> -> vector<8x128xf32>
    %c0_3 = arith.constant 0 : index
    %c0_4 = arith.constant 0 : index
    %3 = vector.load %arg3[%c0_3, %c0_4] : memref<1x128xf32, #tpu.memory_space<vmem>>, vector<1x128xf32>
    %4 = vector.broadcast %3 : vector<1x128xf32> to vector<8x128xf32>
    %5 = arith.addf %2, %4 : vector<8x128xf32>
    %c0_5 = arith.constant 0 : index
    %c0_6 = arith.constant 0 : index
    %6 = vector.load %arg4[%c0_5, %c0_6] : memref<8x128xf32, #tpu.memory_space<vmem>>, vector<8x128xf32>
    tpu.vector_store %arg4[%c0_5, %c0_6], %5 {strides = array<i32>} : memref<8x128xf32, #tpu.memory_space<vmem>>, vector<8x128xf32>,
    return
  }
  func.func @transform_0(%arg0: i32) -> (i32, i32) {
    %c0_i32 = arith.constant 0 : i32
    %c0_i32_0 = arith.constant 0 : i32
    return %arg0, %c0_i32 : i32, i32
  }
  func.func @transform_1(%arg0: i32) -> (i32, i32) {
    %c0_i32 = arith.constant 0 : i32
    %c0_i32_0 = arith.constant 0 : i32
    %c0_i32_1 = arith.constant 0 : i32
    return %c0_i32, %c0_i32_0 : i32, i32
  }
  func.func @transform_2(%arg0: i32) -> (i32, i32) {
    %c0_i32 = arith.constant 0 : i32
    %c0_i32_0 = arith.constant 0 : i32
    %c0_i32_1 = arith.constant 0 : i32
    return %c0_i32, %c0_i32_0 : i32, i32
  }
  func.func @transform_3(%arg0: i32) -> (i32, i32) {
    %c0_i32 = arith.constant 0 : i32
    %c0_i32_0 = arith.constant 0 : i32
    return %arg0, %c0_i32 : i32, i32
  }
}

</mosaic_0001>

<bundles_post_ra>
// kernel: tpu_custom_call.1
= control target key start
LH: loop header
LB: loop body
LE: loop exit
PB: predicated region body
PF: predicated region fallthrough
CT: control target
= control target key end

     0   :  { %vm36_vm0 = vcmask 261120   ;;  %s265_s0 = inlined_call_operand.vmem [shape: f32[8,32], index: 0, kind: input, shape index: {}]   ;;  %s266_s1 = inlined_call_operand.vmem [shape: f32[128,32], index: 1, kind: input, shape index: {}]   ;;  %s267_s2 = inlined_call_operand.vmem [shape: f32[1,128], index: 2, kind: input, shape index: {}]   ;;  %s268_s3 = inlined_call_operand.hbm [shape: f32[8,128], index: 3, kind: output, shape index: {}]  }
   0x1   :  { %v31_v0 = vld [vmem:[%s266_s1 + $0x78] sm:$0xff]  ;;  %v30_v1 = vld [vmem:[%s266_s1 + $0x70] sm:$0xff] }
   0x2   :  { %125 = vmatpush.xpose.msk.msra.mxu0 %vm36_vm0, %v31_v0 }
   0x3   :  { %8 = vsyncpa [#allocation3], 0  ;;  %v29_v2 = vld [vmem:[%s266_s1 + $0x68] sm:$0xff]  ;;  %v28_v3 = vld [vmem:[%s266_s1 + $0x60] sm:$0xff]  ;;  %s170_s21 = smov [#allocation2]   ;;  %s116_s25 = sshll.u32 %s268_s3, 4  ;;  %s117_s25 = int_to_ptr.hbm [resolvable:$true] %s116_s25 }
   0x4   :  { %v27_v4 = vld [vmem:[%s266_s1 + $0x58] sm:$0xff]  ;;  %v26_v5 = vld [vmem:[%s266_s1 + $0x50] sm:$0xff]  ;;  %v25_v6 = vld [vmem:[%s266_s1 + $0x48] sm:$0xff]  ;;  %s114_s22 = sshll.u32 %s170_s21, 4  ;;  %s115_s22 = int_to_ptr.vmem [resolvable:$true] %s114_s22 }
   0x5   :  { %v24_v7 = vld [vmem:[%s266_s1 + $0x40] sm:$0xff]  ;;  %v23_v8 = vld [vmem:[%s266_s1 + $0x38] sm:$0xff]  ;;  %v22_v9 = vld [vmem:[%s266_s1 + $0x30] sm:$0xff] }
   0x6   :  { %126 = vmatpush.xpose.msk.msra.mxu0 %vm36_vm0, %v30_v1  ;;  %v21_v10 = vld [vmem:[%s266_s1 + $0x28] sm:$0xff]  ;;  %v20_v11 = vld [vmem:[%s266_s1 + $0x20] sm:$0xff]  ;;  %v19_v12 = vld [vmem:[%s266_s1 + $0x18] sm:$0xff] }
   0x7   :  { %v18_v13 = vld [vmem:[%s266_s1 + $0x10] sm:$0xff]  ;;  %v17_v14 = vld [vmem:[%s266_s1 + $0x8] sm:$0xff]  ;;  %v16_v15 = vld [vmem:[%s266_s1] sm:$0xff] }
   0x8   :  { %v15_v16 = vld [vmem:[%s265_s0] sm:$0xff] }
   0x9   :  { %v143_v17 = vld [vmem:[%s267_s2] ss:$0 sm:$0xff] }
   0xa   :  { %127 = vmatpush.xpose.msk.msra.mxu0 %vm36_vm0, %v29_v2 }
   0xe   :  { %128 = vmatpush.xpose.msk.msra.mxu0 %vm36_vm0, %v28_v3 }
  0x12   :  { %129 = vmatpush.xpose.msk.msra.mxu0 %vm36_vm0, %v27_v4 }
  0x16   :  { %130 = vmatpush.xpose.msk.msra.mxu0 %vm36_vm0, %v26_v5 }
  0x1a   :  { %131 = vmatpush.xpose.msk.msra.mxu0 %vm36_vm0, %v25_v6 }
  0x1e   :  { %132 = vmatpush.xpose.msk.msra.mxu0 %vm36_vm0, %v24_v7 }
  0x22   :  { %133 = vmatpush.xpose.msk.msra.mxu0 %vm36_vm0, %v23_v8 }
  0x26   :  { %134 = vmatpush.xpose.msk.msra.mxu0 %vm36_vm0, %v22_v9 }
  0x2a   :  { %135 = vmatpush.xpose.msk.msra.mxu0 %vm36_vm0, %v21_v10 }
  0x2e   :  { %136 = vmatpush.xpose.msk.msra.mxu0 %vm36_vm0, %v20_v11 }
  0x32   :  { %137 = vmatpush.xpose.msk.msra.mxu0 %vm36_vm0, %v19_v12 }
  0x36   :  { %138 = vmatpush.xpose.msk.msra.mxu0 %vm36_vm0, %v18_v13 }
  0x3a   :  { %139 = vmatpush.xpose.msk.msra.mxu0 %vm36_vm0, %v17_v14 }
  0x3e   :  { %140 = vmatpush.xpose.msk.msra.mxu0 %vm36_vm0, %v16_v15 }
  0x41   :  { %141 = vmatmul.msk.f32.vlgmr.msra.gmra.mxu0 %vm36_vm0, %v15_v16 }
  0xbe   :  { %v105_v18 = vpop.f32.mrf.mxu0 }
  0xbf   :  { %v106_v19 = vadd.f32 %v143_v17, %v105_v18 }
  0xc1   :  { %108 = vst [vmem:[#allocation2] sm:$0xff] %v106_v19 }
  0xc2   :  { %119 = dma.vmem_to_hbm [thread:$0]  %s115_s22, 128, %s117_s25, [#allocation3]  }
  0xc3   :  { %168 = dma.done.wait [#allocation3], 128  }
  0xc4   :  { %169 = vsyncadd [#allocation3], 4294967168 }
  0xc5   :  { %124 = vsyncpa [#allocation3], 1 }

</bundles_post_ra>
